<compile_context>
chip_gen: v5e
topology: v5e:2x2
jax: 0.10.0
libtpu: 0.0.40
codegen_flags: <defaults>
</compile_context>

<pallas_src>
import jax
import jax.numpy as jnp
import numpy as np
from jax.experimental import pallas as pl
from jax.experimental.pallas import tpu as pltpu


_LANE = 128          # lane-dense last dim: full vreg width -> unmasked vst
_MAX_TILE_M = 1024   # rows/tile: input block 4*1024*128*4B = 2 MiB (f32),
                     # output 0.5 MiB; ~5 MiB live double-buffered (v7x-safe)


def _stochastic_pool_kernel(seed_ref, c_ref, o_ref):
    """Per element: pick one of the 4 stacked corner planes uniformly.

    seed_ref: (1,) int32 in SMEM
    c_ref:    (4, TILE_M, LANE) stacked window corners (0,0),(0,1),(1,0),(1,1)
    o_ref:    (TILE_M, LANE)
    """
    tm, lane = o_ref.shape
    base = pl.program_id(0) * tm
    row = jax.lax.broadcasted_iota(jnp.int32, (tm, lane), 0) + base
    col = jax.lax.broadcasted_iota(jnp.int32, (tm, lane), 1)
    gidx = (row * lane + col).astype(jnp.uint32)   # global element counter

    # Counter-based hash: murmur3 fmix32 of (global index, seed).
    # Distinct per grid tile (uses global index), deterministic given seed.
    seed = seed_ref[0].astype(jnp.uint32)
    h = gidx ^ (seed * jnp.uint32(0x9E3779B9))
    h = h ^ (h >> 16)
    h = h * jnp.uint32(0x85EBCA6B)
    h = h ^ (h >> 13)
    h = h * jnp.uint32(0xC2B2AE35)
    h = h ^ (h >> 16)

    b0 = (h & jnp.uint32(1)) != 0   # low bit of the 2-bit index
    b1 = (h & jnp.uint32(2)) != 0   # high bit

    # 2-level binary select, entirely in the input dtype (no upcasting).
    lo = jnp.where(b0, c_ref[1], c_ref[0])   # index 0 / 1
    hi = jnp.where(b0, c_ref[3], c_ref[2])   # index 2 / 3
    o_ref[...] = jnp.where(b1, hi, lo)


def stochastic_pool2d(x, seed: int):
    """Uniform 2x2 stochastic pooling (stride 2, no padding).

    Output: (N, C, H//2, W//2), same dtype as x; every output element is one
    of the 4 activations of its own 2x2 window, chosen uniformly at random.
    """
    N, C, H, W = x.shape
    # Reference module assumes even spatial dims; crop the tail defensively
    # (matches unfold(kernel=2, stride=2) which drops trailing odd rows/cols).
    H2, W2 = (H // 2) * 2, (W // 2) * 2
    if (H2, W2) != (H, W):
        x = x[:, :, :H2, :W2]
    Ho, Wo = H2 // 2, W2 // 2

    # Single contiguous transpose pass: corners of every window, stacked.
    # corner order k = 2*kh + kw -> (0,0), (0,1), (1,0), (1,1)
    corners = (
        x.reshape(N * C, Ho, 2, Wo, 2)
        .transpose(2, 4, 0, 1, 3)
        .reshape(4, -1)
    )
    E = corners.shape[1]  # number of 2x2 windows

    # Lane-dense 2D layout (rows, 128); tile rows with a 1-D grid.
    rows = -(-E // _LANE)
    if rows >= _MAX_TILE_M:
        tile_m = _MAX_TILE_M
    else:
        tile_m = -(-rows // 16) * 16          # multiple of 16: safe for f32/bf16
    grid_m = -(-rows // tile_m)
    rows_pad = grid_m * tile_m
    e_pad = rows_pad * _LANE
    if e_pad != E:
        corners = jnp.pad(corners, ((0, 0), (0, e_pad - E)))
    corners = corners.reshape(4, rows_pad, _LANE)

    seed_arr = jnp.asarray([seed], dtype=jnp.int32)

    out = pl.pallas_call(
        _stochastic_pool_kernel,
        out_shape=jax.ShapeDtypeStruct((rows_pad, _LANE), x.dtype),
        grid=(grid_m,),
        in_specs=[
            pl.BlockSpec(memory_space=pltpu.MemorySpace.SMEM),        # seed
            pl.BlockSpec((4, tile_m, _LANE), lambda i: (0, i, 0)),    # corners
        ],
        out_specs=pl.BlockSpec((tile_m, _LANE), lambda i: (i, 0)),
        compiler_params=pltpu.CompilerParams(
            dimension_semantics=("parallel",),   # v7x: split grid across 2 TCs
        ),
    )(seed_arr, corners)

    return out.reshape(-1)[:E].reshape(N, C, Ho, Wo)


if __name__ == "__main__":
    key = jax.random.PRNGKey(0)
    x = jax.random.normal(key, (2, 4, 16, 16), dtype=jnp.float32)  # NCHW

    y = stochastic_pool2d(x, seed=0)
    y = jax.block_until_ready(y)

    assert y.shape == (2, 4, 8, 8), y.shape
    assert y.dtype == x.dtype

    # Correctness: every output element equals one of its own 2x2 window inputs.
    xn = np.asarray(x)
    yn = np.asarray(y)
    win = np.stack(
        [xn[:, :, 0::2, 0::2], xn[:, :, 0::2, 1::2],
         xn[:, :, 1::2, 0::2], xn[:, :, 1::2, 1::2]],
        axis=-1,
    )
    match = np.isclose(win, yn[..., None])
    assert match.any(axis=-1).all(), "output element not drawn from its own 2x2 window"

    # Crude randomness sanity check: the selection is not (near-)constant.
    chosen = match.argmax(axis=-1)
    assert np.unique(chosen).size >= 3, "stochastic selection looks degenerate"

    print("KERNEL_OK")
</pallas_src>

<mosaic_0001>
module attributes {stable_mosaic.version = 11 : i64} {
  func.func @_stochastic_pool_kernel(%arg0: i32, %arg1: memref<1xi32, #tpu.memory_space<smem>>, %arg2: memref<4x16x128xf32, #tpu.memory_space<vmem>>, %arg3: memref<16x128xf32, #tpu.memory_space<vmem>>) attributes {dimension_semantics = [#tpu.dimension_semantics<parallel>], iteration_bounds = array<i64: 1>, scalar_prefetch = 0 : i64, scratch_operands = 0 : i64, tpu.core_type = #tpu.core_type<tc>, window_params = [{transform_indices = @transform_0, window_bounds = array<i64: 1>}, {transform_indices = @transform_1, window_bounds = array<i64: 4, 16, 128>}, {transform_indices = @transform_2, window_bounds = array<i64: 16, 128>}]} {
    %c16_i32 = arith.constant 16 : i32
    %0 = arith.muli %arg0, %c16_i32 : i32
    %1 = tpu.iota {dimensions = array<i32: 0>} : vector<16x128xi32>
    %2 = vector.broadcast %0 : i32 to vector<16x128xi32>
    %3 = arith.addi %1, %2 : vector<16x128xi32>
    %4 = tpu.iota {dimensions = array<i32: 1>} : vector<16x128xi32>
    %c128_i32 = arith.constant 128 : i32
    %5 = vector.broadcast %c128_i32 : i32 to vector<16x128xi32>
    %6 = arith.muli %3, %5 : vector<16x128xi32>
    %7 = arith.addi %6, %4 : vector<16x128xi32>
    %c0 = arith.constant 0 : index
    %8 = memref.load %arg1[%c0] : memref<1xi32, #tpu.memory_space<smem>>
    %c-1640531527_i32 = arith.constant -1640531527 : i32
    %9 = arith.muli %8, %c-1640531527_i32 : i32
    %10 = vector.broadcast %9 : i32 to vector<16x128xi32>
    %11 = arith.xori %7, %10 : vector<16x128xi32>
    %c16_i32_0 = arith.constant 16 : i32
    %12 = vector.broadcast %c16_i32_0 : i32 to vector<16x128xi32>
    %13 = arith.shrui %11, %12 : vector<16x128xi32>
    %14 = arith.xori %11, %13 : vector<16x128xi32>
    %c-2048144789_i32 = arith.constant -2048144789 : i32
    %15 = vector.broadcast %c-2048144789_i32 : i32 to vector<16x128xi32>
    %16 = arith.muli %14, %15 : vector<16x128xi32>
    %c13_i32 = arith.constant 13 : i32
    %17 = vector.broadcast %c13_i32 : i32 to vector<16x128xi32>
    %18 = arith.shrui %16, %17 : vector<16x128xi32>
    %19 = arith.xori %16, %18 : vector<16x128xi32>
    %c-1028477387_i32 = arith.constant -1028477387 : i32
    %20 = vector.broadcast %c-1028477387_i32 : i32 to vector<16x128xi32>
    %21 = arith.muli %19, %20 : vector<16x128xi32>
    %c16_i32_1 = arith.constant 16 : i32
    %22 = vector.broadcast %c16_i32_1 : i32 to vector<16x128xi32>
    %23 = arith.shrui %21, %22 : vector<16x128xi32>
    %24 = arith.xori %21, %23 : vector<16x128xi32>
    %c1_i32 = arith.constant 1 : i32
    %25 = vector.broadcast %c1_i32 : i32 to vector<16x128xi32>
    %26 = arith.andi %24, %25 : vector<16x128xi32>
    %c0_i32 = arith.constant 0 : i32
    %27 = vector.broadcast %c0_i32 : i32 to vector<16x128xi32>
    %28 = arith.cmpi ne, %26, %27 : vector<16x128xi32>
    %c2_i32 = arith.constant 2 : i32
    %29 = vector.broadcast %c2_i32 : i32 to vector<16x128xi32>
    %30 = arith.andi %24, %29 : vector<16x128xi32>
    %c0_i32_2 = arith.constant 0 : i32
    %31 = vector.broadcast %c0_i32_2 : i32 to vector<16x128xi32>
    %32 = arith.cmpi ne, %30, %31 : vector<16x128xi32>
    %c1 = arith.constant 1 : index
    %c0_3 = arith.constant 0 : index
    %c0_4 = arith.constant 0 : index
    %33 = vector.load %arg2[%c1, %c0_3, %c0_4] : memref<4x16x128xf32, #tpu.memory_space<vmem>>, vector<1x16x128xf32>
    %34 = vector.shape_cast %33 : vector<1x16x128xf32> to vector<16x128xf32>
    %c0_5 = arith.constant 0 : index
    %c0_6 = arith.constant 0 : index
    %c0_7 = arith.constant 0 : index
    %35 = vector.load %arg2[%c0_5, %c0_6, %c0_7] : memref<4x16x128xf32, #tpu.memory_space<vmem>>, vector<1x16x128xf32>
    %36 = vector.shape_cast %35 : vector<1x16x128xf32> to vector<16x128xf32>
    %37 = arith.select %28, %34, %36 : vector<16x128xi1>, vector<16x128xf32>
    %c3 = arith.constant 3 : index
    %c0_8 = arith.constant 0 : index
    %c0_9 = arith.constant 0 : index
    %38 = vector.load %arg2[%c3, %c0_8, %c0_9] : memref<4x16x128xf32, #tpu.memory_space<vmem>>, vector<1x16x128xf32>
    %39 = vector.shape_cast %38 : vector<1x16x128xf32> to vector<16x128xf32>
    %c2 = arith.constant 2 : index
    %c0_10 = arith.constant 0 : index
    %c0_11 = arith.constant 0 : index
    %40 = vector.load %arg2[%c2, %c0_10, %c0_11] : memref<4x16x128xf32, #tpu.memory_space<vmem>>, vector<1x16x128xf32>
    %41 = vector.shape_cast %40 : vector<1x16x128xf32> to vector<16x128xf32>
    %42 = arith.select %28, %39, %41 : vector<16x128xi1>, vector<16x128xf32>
    %43 = arith.select %32, %42, %37 : vector<16x128xi1>, vector<16x128xf32>
    %c0_12 = arith.constant 0 : index
    %c0_13 = arith.constant 0 : index
    %44 = vector.load %arg3[%c0_12, %c0_13] : memref<16x128xf32, #tpu.memory_space<vmem>>, vector<16x128xf32>
    tpu.vector_store %arg3[%c0_12, %c0_13], %43 {strides = array<i32>} : memref<16x128xf32, #tpu.memory_space<vmem>>, vector<16x128xf32>,
    return
  }
  func.func @transform_0(%arg0: i32) -> i32 {
    %c0_i32 = arith.constant 0 : i32
    %c0_i32_0 = arith.constant 0 : i32
    return %c0_i32 : i32
  }
  func.func @transform_1(%arg0: i32) -> (i32, i32, i32) {
    %c0_i32 = arith.constant 0 : i32
    %c0_i32_0 = arith.constant 0 : i32
    %c0_i32_1 = arith.constant 0 : i32
    return %c0_i32, %arg0, %c0_i32_0 : i32, i32, i32
  }
  func.func @transform_2(%arg0: i32) -> (i32, i32) {
    %c0_i32 = arith.constant 0 : i32
    %c0_i32_0 = arith.constant 0 : i32
    return %arg0, %c0_i32 : i32, i32
  }
}

</mosaic_0001>

<bundles_post_ra>
// kernel: tpu_custom_call.1
= control target key start
LH: loop header
LB: loop body
LE: loop exit
PB: predicated region body
PF: predicated region fallthrough
CT: control target
= control target key end

     0   :  { %8 = vsyncpa [#allocation4], 0  ;;  %s199_s0 = inlined_call_operand.<no memory space> [shape: s32[1], index: 0, kind: input, shape index: {}]   ;;  %s200_s1 = inlined_call_operand.hbm [shape: f32[4,16,128], index: 1, kind: input, shape index: {}]   ;;  %s201_s2 = inlined_call_operand.hbm [shape: f32[16,128], index: 2, kind: output, shape index: {}]  }
   0x1   :  { %9 = vsyncpa [#allocation5], 0  ;;  %s16_s11 = sshll.u32 %s200_s1, 4  ;;  %s165_s12 = smov [#allocation3]   ;;  %s17_s11 = int_to_ptr.hbm [resolvable:$true] %s16_s11 }
   0x2   :  { %s18_s13 = sshll.u32 %s165_s12, 4  ;;  %s166_s14 = smov 128   ;;  %s19_s13 = int_to_ptr.vmem [resolvable:$true] %s18_s13 }
   0x3   :  { %s167_s15 = smov 8  }
   0x4   :  { %24 = dma.hbm_to_vmem [thread:$0]  %s17_s11, 1024, %s19_s13, [#allocation4], %s166_s14, %s166_s14, %s167_s15  }
   0x5   :  { %161 = dma.done.wait [#allocation4], 1024  }
   0x6   :  { %162 = vsyncadd [#allocation4], 4294966272  ;;  %v30_v0 = vlaneseq  ;;  %s43_s18 = smul.u32 2654435769, %s199_s0  ;;  %v72_v26 = vld [vmem:[#allocation3 + $0x10] sm:$0xff]  ;;  %v74_v29 = vld [vmem:[#allocation3] sm:$0xff] }
   0x7   :  { %v79_v30 = vld [vmem:[#allocation3 + $0x30] sm:$0xff]  ;;  %v82_v31 = vld [vmem:[#allocation3 + $0x20] sm:$0xff]  ;;  %v73_v33 = vld [vmem:[#allocation3 + $0x18] sm:$0xff]  ;;  %s168_s0 = smov [#allocation6]   ;;  %s96_s21 = sshll.u32 %s201_s2, 4  ;;  %s97_s21 = int_to_ptr.hbm [resolvable:$true] %s96_s21 }
   0x8   :  { %v31_v1 = vshrl.u32 %v30_v0, 7  ;;  %v37_v2 = vand.u32 127, %v30_v0  ;;  %v44_v5 = vstv %s43_s18  ;;  %v75_v34 = vld [vmem:[#allocation3 + $0x8] sm:$0xff]  ;;  %s94_s1 = sshll.u32 %s168_s0, 4  ;;  %v80_v37 = vld [vmem:[#allocation3 + $0x38] sm:$0xff]  ;;  %s95_s1 = int_to_ptr.vmem [resolvable:$true] %s94_s1 }
   0x9   :  { %v83_v38 = vld [vmem:[#allocation3 + $0x28] sm:$0xff] }
   0xa   :  { %v38_v3 = vmul.u32 128, %v31_v1  ;;  %v32_v4 = vadd.s32 8, %v31_v1 }
   0xc   :  { %v40_v6 = vadd.s32 %v38_v3, %v37_v2  ;;  %v39_v7 = vmul.u32 128, %v32_v4 }
   0xe   :  { %v45_v8 = vxor.u32 %v44_v5, %v40_v6  ;;  %v41_v9 = vadd.s32 %v39_v7, %v37_v2 }
  0x10   :  { %v47_v10 = vshrl.u32 %v45_v8, 16  ;;  %v46_v11 = vxor.u32 %v44_v5, %v41_v9 }
  0x12   :  { %v49_v12 = vxor.u32 %v47_v10, %v45_v8  ;;  %v48_v13 = vshrl.u32 %v46_v11, 16 }
  0x14   :  { %v51_v14 = vmul.u32 2246822507, %v49_v12  ;;  %v50_v15 = vxor.u32 %v48_v13, %v46_v11 }
  0x16   :  { %v53_v16 = vshrl.u32 %v51_v14, 13  ;;  %v52_v17 = vmul.u32 2246822507, %v50_v15 }
  0x18   :  { %v55_v18 = vxor.u32 %v53_v16, %v51_v14  ;;  %v54_v19 = vshrl.u32 %v52_v17, 13 }
  0x1a   :  { %v57_v20 = vmul.u32 3266489909, %v55_v18  ;;  %v56_v21 = vxor.u32 %v54_v19, %v52_v17 }
  0x1c   :  { %v59_v22 = vshrl.u32 %v57_v20, 16  ;;  %v58_v23 = vmul.u32 3266489909, %v56_v21 }
  0x1e   :  { %v61_v24 = vxor.u32 %v59_v22, %v57_v20  ;;  %v60_v25 = vshrl.u32 %v58_v23, 16 }
  0x20   :  { %v63_v27 = vand.u32 1, %v61_v24  ;;  %v67_v28 = vand.u32 2, %v61_v24  ;;  %v62_v32 = vxor.u32 %v60_v25, %v58_v23 }
  0x22   :  { %vm65_vm0 = vcmp.ne.s32.totalorder %v63_v27, 0  ;;  %vm69_vm1 = vcmp.ne.s32.totalorder %v67_v28, 0  ;;  %v64_v35 = vand.u32 1, %v62_v32  ;;  %v68_v36 = vand.u32 2, %v62_v32 }
  0x23   :  { %v76_v39 = vsel %vm65_vm0, %v72_v26, %v74_v29  ;;  %v84_v40 = vsel %vm65_vm0, %v79_v30, %v82_v31 }
  0x24   :  { %v86_v41 = vsel %vm69_vm1, %v84_v40, %v76_v39  ;;  %vm66_vm2 = vcmp.ne.s32.totalorder %v64_v35, 0  ;;  %vm70_vm3 = vcmp.ne.s32.totalorder %v68_v36, 0 }
  0x25   :  { %88 = vst [vmem:[#allocation6] sm:$0xff] %v86_v41  ;;  %v77_v42 = vsel %vm66_vm2, %v73_v33, %v75_v34  ;;  %v85_v43 = vsel %vm66_vm2, %v80_v37, %v83_v38 }
  0x26   :  { %v87_v44 = vsel %vm70_vm3, %v85_v43, %v77_v42 }
  0x27   :  { %89 = vst [vmem:[#allocation6 + $0x8] sm:$0xff] %v87_v44 }
  0x28   :  { %102 = dma.vmem_to_hbm [thread:$0]  %s95_s1, 256, %s97_s21, [#allocation5], %s166_s14, %s166_s14, %s167_s15  }
  0x29   :  { %163 = dma.done.wait [#allocation5], 256  }
  0x2a   :  { %164 = vsyncadd [#allocation5], 4294967040 }
  0x2b   :  { %107 = vsyncpa [#allocation4], 1 }
  0x2c   :  { %108 = vsyncpa [#allocation5], 1 }

</bundles_post_ra>
